<compile_context>
chip_gen: v7x
topology: tpu7x:2x2x1
jax: 0.10.0
libtpu: 0.0.40
codegen_flags: <defaults>
</compile_context>

<pallas_src>
import functools

import jax
import jax.numpy as jnp
from jax.experimental import pallas as pl
from jax.experimental.pallas import tpu as pltpu


def _round_up(x, m):
    return ((x + m - 1) // m) * m


# ----------------------------------------------------------------------------
# Kernel 1: fused EMA update over one lane-dense parameter slab
#   shadow <- shadow - (1 - decay) * (shadow - param)
# ----------------------------------------------------------------------------
_EMA_LANES = 512            # 4 * 128 lanes -> full, unmasked vector stores
_EMA_MAX_BLOCK_ROWS = 2048  # (2048, 512) f32 block = 4 MiB.  3 arrays
                            # (shadow, params, out) x 2 pipeline buffers
                            # = 24 MiB: under the 32 MiB scoped-VMEM default
                            # on every generation (v7x only has 64 MiB
                            # physical, so we do NOT push to 4096 rows even
                            # though v5e/v6e's 128 MiB could take it).


def _slab_geometry(total_elems):
    """Padded size / rows / block-rows for a (rows, _EMA_LANES) f32 slab."""
    block_elems = 8 * _EMA_LANES                       # full-sublane minimum tile
    padded = _round_up(total_elems, block_elems)
    rows = padded // _EMA_LANES
    if rows > _EMA_MAX_BLOCK_ROWS:
        rows = _round_up(rows, _EMA_MAX_BLOCK_ROWS)
        padded = rows * _EMA_LANES
        block_rows = _EMA_MAX_BLOCK_ROWS
    else:
        block_rows = rows                              # single block
    return padded, rows, block_rows


def _flatten_to_slab(tree):
    """Flatten a param pytree into one lane-dense f32 slab + metadata."""
    leaves, treedef = jax.tree_util.tree_flatten(tree)
    shapes = [l.shape for l in leaves]
    dtypes = [l.dtype for l in leaves]
    sizes = [l.size for l in leaves]
    total = sum(sizes)
    padded, rows, block_rows = _slab_geometry(total)
    flat = jnp.concatenate([l.reshape(-1).astype(jnp.float32) for l in leaves])
    flat = jnp.pad(flat, (0, padded - total))
    slab = flat.reshape(rows, _EMA_LANES)
    meta = {
        "treedef": treedef, "shapes": shapes, "dtypes": dtypes,
        "sizes": sizes, "total": total, "block_rows": block_rows,
    }
    return slab, meta


def _unflatten_from_slab(slab, meta):
    flat = slab.reshape(-1)[: meta["total"]]
    leaves, off = [], 0
    for shp, dt, sz in zip(meta["shapes"], meta["dtypes"], meta["sizes"]):
        leaves.append(flat[off:off + sz].reshape(shp).astype(dt))
        off += sz
    return jax.tree_util.tree_unflatten(meta["treedef"], leaves)


def _ema_kernel(shadow_ref, param_ref, decay_ref, out_ref):
    s = shadow_ref[...]
    p = param_ref[...]
    one_minus_decay = 1.0 - decay_ref[0]   # SMEM scalar -> no recompile per decay
    out_ref[...] = s - one_minus_decay * (s - p)


@functools.partial(jax.jit, static_argnames=("block_rows",), donate_argnums=(0,))
def _ema_slab_update(shadow_slab, param_slab, decay_arr, *, block_rows):
    """One fused, donated, in-place EMA update of every parameter in the slab."""
    rows, cols = shadow_slab.shape
    blk = pl.BlockSpec((block_rows, cols), lambda i: (i, 0))
    return pl.pallas_call(
        _ema_kernel,
        out_shape=jax.ShapeDtypeStruct(shadow_slab.shape, shadow_slab.dtype),
        grid=(rows // block_rows,),
        in_specs=[
            blk,                                                  # shadow (aliased)
            blk,                                                  # live params
            pl.BlockSpec(memory_space=pltpu.MemorySpace.SMEM),    # decay scalar
        ],
        out_specs=blk,
        input_output_aliases={0: 0},   # + jit donation -> true in-place HBM write
        compiler_params=pltpu.CompilerParams(dimension_semantics=("parallel",)),
    )(shadow_slab, param_slab, decay_arr)


# ----------------------------------------------------------------------------
# Kernel 2: fused MLP forward  y = relu(x @ W1 + b1) @ W2 + b2
#   bf16 MXU inputs, f32 accumulation.
# ----------------------------------------------------------------------------
def _mlp_kernel(x_ref, w1_ref, b1_ref, w2_ref, b2_ref, o_ref):
    h = jnp.dot(x_ref[...], w1_ref[...], preferred_element_type=jnp.float32)
    h = jnp.maximum(h + b1_ref[...], 0.0)
    y = jnp.dot(h.astype(jnp.bfloat16), w2_ref[...],
                preferred_element_type=jnp.float32)
    o_ref[...] = (y + b2_ref[...]).astype(o_ref.dtype)


def _pick_batch_tile(padded_b, tile_b):
    """Largest multiple-of-8 divisor of padded_b that is <= tile_b; prefer >=2
    grid steps when the batch allows so v7x's 2 TensorCores both get work."""
    n = padded_b // 8
    best = 8
    for d in range(1, n + 1):
        if n % d == 0 and 8 * d <= tile_b:
            best = 8 * d
    if best == padded_b and padded_b >= 16 and (padded_b // 2) % 8 == 0:
        best = padded_b // 2
    return best


@functools.partial(jax.jit, static_argnames=("tile_b",))
def mlp_forward(x, params, *, tile_b=256):
    # tile_b=256 fills the 256-wide MXU on v6e/v7x and amortizes per-grid-step
    # overhead; 128-row batches (v5e-matched) still work since tb = min(...).
    out_dtype = x.dtype
    B, IN = x.shape
    w1 = params["w1"].astype(jnp.bfloat16)
    b1 = params["b1"].astype(jnp.float32)
    w2 = params["w2"].astype(jnp.bfloat16)
    b2 = params["b2"].astype(jnp.float32)
    HID, OUT = w1.shape[1], w2.shape[1]

    Bp = _round_up(B, 8)                       # pad ragged batches, don't assert
    tb = _pick_batch_tile(Bp, tile_b)

    x_b = x.astype(jnp.bfloat16)
    if Bp != B:
        x_b = jnp.pad(x_b, ((0, Bp - B), (0, 0)))

    # Weights/biases stay resident in VMEM (constant index_map).
    # TODO(synk): if the MLP is scaled beyond toy dims, add a K grid axis with an
    # f32 accumulator scratch (and/or pl.Buffered(1) on these resident specs) so
    # the weights fit v7x's 64 MiB VMEM.
    resident = lambda shp: pl.BlockSpec(shp, lambda i: (0, 0))
    y = pl.pallas_call(
        _mlp_kernel,
        out_shape=jax.ShapeDtypeStruct((Bp, OUT), out_dtype),
        grid=(Bp // tb,),                        # pipeline over batch tiles
        in_specs=[
            pl.BlockSpec((tb, IN), lambda i: (i, 0)),
            resident((IN, HID)), resident((1, HID)),
            resident((HID, OUT)), resident((1, OUT)),
        ],
        out_specs=pl.BlockSpec((tb, OUT), lambda i: (i, 0)),
        compiler_params=pltpu.CompilerParams(
            dimension_semantics=("parallel",)),  # v7x: shard batch tiles over 2 TCs
    )(x_b, w1, b1, w2, b2)
    return y[:B] if Bp != B else y


# ----------------------------------------------------------------------------
# The EMA module (pytree-of-params version of the PyTorch class)
# ----------------------------------------------------------------------------
class ExponentialMovingAverageModule:
    def __init__(self, model_params, decay):
        self.decay = float(decay)
        self._decay_arr = jnp.full((1,), self.decay, jnp.float32)
        self.training = True
        # Live params also live permanently as a slab so update() never
        # re-flattens (concat/pad happens once per parameter assignment).
        self._set_model(model_params)
        # deepcopy(model): shadow is a separate slab copy (donation-safe).
        self._shadow_slab = jnp.copy(self._model_slab)
        self._shadow_tree = None
        # NOTE: shadow kept in f32 regardless of param dtype (>= PyTorch precision).
        # TODO(synk): the synthetic MLP has no buffers; the buffer copy-through of
        # the PyTorch update() is a no-op here.

    # ---- live model params (kept as tree for forward + slab for update) ----
    def _set_model(self, tree):
        slab, meta = _flatten_to_slab(tree)
        self._model_slab = slab
        self._slab_meta = meta
        self._model_tree = tree

    @property
    def model_params(self):
        return self._model_tree

    @model_params.setter
    def model_params(self, tree):
        self._set_model(tree)

    # ---- shadow params ----
    @property
    def shadow_params(self):
        if self._shadow_tree is None:
            self._shadow_tree = _unflatten_from_slab(self._shadow_slab, self._slab_meta)
        return self._shadow_tree

    def update(self):
        # Single fused, donated/aliased kernel launch covering every parameter.
        self._shadow_slab = _ema_slab_update(
            self._shadow_slab, self._model_slab, self._decay_arr,
            block_rows=self._slab_meta["block_rows"])
        self._shadow_tree = None          # invalidate unflattened cache

    def train(self):
        self.training = True
        return self

    def eval(self):
        self.training = False
        return self

    def __call__(self, x):
        params = self._model_tree if self.training else self.shadow_params
        return mlp_forward(x, params)


# ----------------------------------------------------------------------------
# Driver
# ----------------------------------------------------------------------------
if __name__ == "__main__":
    key = jax.random.PRNGKey(0)
    k1, k2, k3, k4, kx, kp = jax.random.split(key, 6)

    # Small, but IN/HID/OUT are multiples of 128 so matmuls / stores are lane-dense.
    B, IN, HID, OUT = 8, 128, 128, 128
    params = {
        "w1": jax.random.normal(k1, (IN, HID), jnp.float32) * 0.1,
        "b1": jax.random.normal(k2, (1, HID), jnp.float32) * 0.1,
        "w2": jax.random.normal(k3, (HID, OUT), jnp.float32) * 0.1,
        "b2": jax.random.normal(k4, (1, OUT), jnp.float32) * 0.1,
    }
    x = jax.random.normal(kx, (B, IN), jnp.float32)

    ema = ExponentialMovingAverageModule(params, decay=0.99)

    # training-mode forward: uses the live model parameters (== `params` here)
    y_train = ema(x)

    # simulate a training step that moves the live params, then EMA-update
    step_keys = dict(zip(sorted(params.keys()), jax.random.split(kp, len(params))))
    new_params = {
        k: params[k] + 0.01 * jax.random.normal(step_keys[k], params[k].shape, params[k].dtype)
        for k in params
    }
    ema.model_params = new_params
    ema.update()

    # eval-mode forward: uses the EMA shadow parameters
    ema.eval()
    y_eval = ema(x)

    shadow = ema.shadow_params
    jax.block_until_ready((y_train, y_eval, shadow))

    # ----- plain-JAX reference checks -----
    decay = 0.99
    ref_shadow = {k: params[k] - (1.0 - decay) * (params[k] - new_params[k]) for k in params}
    for k in params:
        assert jnp.allclose(ref_shadow[k], shadow[k], atol=1e-6, rtol=1e-5), k

    def ref_mlp(xx, p):
        # mirrors the kernel's bf16-input / f32-accumulation matmul math
        xb = xx.astype(jnp.bfloat16)
        w1 = p["w1"].astype(jnp.bfloat16)
        w2 = p["w2"].astype(jnp.bfloat16)
        h = jnp.maximum(
            jnp.dot(xb, w1, preferred_element_type=jnp.float32) + p["b1"], 0.0)
        return jnp.dot(h.astype(jnp.bfloat16), w2,
                       preferred_element_type=jnp.float32) + p["b2"]

    # y_train was produced with the ORIGINAL params (forward ran before the
    # parameter step), so it is compared against `params`, not `new_params`.
    assert jnp.allclose(ref_mlp(x, params), y_train, atol=1e-2, rtol=1e-2)
    assert jnp.allclose(ref_mlp(x, ref_shadow), y_eval, atol=1e-2, rtol=1e-2)

    print("KERNEL_OK")
</pallas_src>

<mosaic_0001>
module attributes {stable_mosaic.version = 11 : i64} {
  func.func @_mlp_kernel(%arg0: i32, %arg1: memref<8x128xbf16, #tpu.memory_space<vmem>>, %arg2: memref<128x128xbf16, #tpu.memory_space<vmem>>, %arg3: memref<1x128xf32, #tpu.memory_space<vmem>>, %arg4: memref<128x128xbf16, #tpu.memory_space<vmem>>, %arg5: memref<1x128xf32, #tpu.memory_space<vmem>>, %arg6: memref<8x128xf32, #tpu.memory_space<vmem>>) attributes {dimension_semantics = [#tpu.dimension_semantics<parallel>], iteration_bounds = array<i64: 1>, scalar_prefetch = 0 : i64, scratch_operands = 0 : i64, tpu.core_type = #tpu.core_type<tc>, window_params = [{transform_indices = @transform_0, window_bounds = array<i64: 8, 128>}, {pipeline_mode = #tpu.pipeline_mode<synchronous>, transform_indices = @transform_1, window_bounds = array<i64: 128, 128>}, {pipeline_mode = #tpu.pipeline_mode<synchronous>, transform_indices = @transform_2, window_bounds = array<i64: 1, 128>}, {pipeline_mode = #tpu.pipeline_mode<synchronous>, transform_indices = @transform_3, window_bounds = array<i64: 128, 128>}, {pipeline_mode = #tpu.pipeline_mode<synchronous>, transform_indices = @transform_4, window_bounds = array<i64: 1, 128>}, {transform_indices = @transform_5, window_bounds = array<i64: 8, 128>}]} {
    %c0 = arith.constant 0 : index
    %c0_0 = arith.constant 0 : index
    %0 = vector.load %arg1[%c0, %c0_0] : memref<8x128xbf16, #tpu.memory_space<vmem>>, vector<8x128xbf16>
    %c0_1 = arith.constant 0 : index
    %c0_2 = arith.constant 0 : index
    %1 = vector.load %arg2[%c0_1, %c0_2] : memref<128x128xbf16, #tpu.memory_space<vmem>>, vector<128x128xbf16>
    %cst = arith.constant dense<0.000000e+00> : vector<8x128xf32>
    %2 = tpu.matmul %0, %1, %cst {dimension_numbers = #tpu.dot_dimension_numbers<[1], [0], [0], [1], [0, 0, 1, 1], [], []>} : vector<8x128xbf16>, vector<128x128xbf16>, vector<8x128xf32> -> vector<8x128xf32>
    %c0_3 = arith.constant 0 : index
    %c0_4 = arith.constant 0 : index
    %3 = vector.load %arg3[%c0_3, %c0_4] : memref<1x128xf32, #tpu.memory_space<vmem>>, vector<1x128xf32>
    %4 = vector.broadcast %3 : vector<1x128xf32> to vector<8x128xf32>
    %5 = arith.addf %2, %4 : vector<8x128xf32>
    %cst_5 = arith.constant 0.000000e+00 : f32
    %6 = vector.broadcast %cst_5 : f32 to vector<8x128xf32>
    %7 = arith.maximumf %5, %6 : vector<8x128xf32>
    %8 = arith.truncf %7 : vector<8x128xf32> to vector<8x128xbf16>
    %c0_6 = arith.constant 0 : index
    %c0_7 = arith.constant 0 : index
    %9 = vector.load %arg4[%c0_6, %c0_7] : memref<128x128xbf16, #tpu.memory_space<vmem>>, vector<128x128xbf16>
    %cst_8 = arith.constant dense<0.000000e+00> : vector<8x128xf32>
    %10 = tpu.matmul %8, %9, %cst_8 {dimension_numbers = #tpu.dot_dimension_numbers<[1], [0], [0], [1], [0, 0, 1, 1], [], []>} : vector<8x128xbf16>, vector<128x128xbf16>, vector<8x128xf32> -> vector<8x128xf32>
    %c0_9 = arith.constant 0 : index
    %c0_10 = arith.constant 0 : index
    %11 = vector.load %arg5[%c0_9, %c0_10] : memref<1x128xf32, #tpu.memory_space<vmem>>, vector<1x128xf32>
    %12 = vector.broadcast %11 : vector<1x128xf32> to vector<8x128xf32>
    %13 = arith.addf %10, %12 : vector<8x128xf32>
    %c0_11 = arith.constant 0 : index
    %c0_12 = arith.constant 0 : index
    %14 = vector.load %arg6[%c0_11, %c0_12] : memref<8x128xf32, #tpu.memory_space<vmem>>, vector<8x128xf32>
    tpu.vector_store %arg6[%c0_11, %c0_12], %13 {strides = array<i32>} : memref<8x128xf32, #tpu.memory_space<vmem>>, vector<8x128xf32>,
    return
  }
  func.func @transform_0(%arg0: i32) -> (i32, i32) {
    %c0_i32 = arith.constant 0 : i32
    %c0_i32_0 = arith.constant 0 : i32
    return %arg0, %c0_i32 : i32, i32
  }
  func.func @transform_1(%arg0: i32) -> (i32, i32) {
    %c0_i32 = arith.constant 0 : i32
    %c0_i32_0 = arith.constant 0 : i32
    %c0_i32_1 = arith.constant 0 : i32
    return %c0_i32, %c0_i32_0 : i32, i32
  }
  func.func @transform_2(%arg0: i32) -> (i32, i32) {
    %c0_i32 = arith.constant 0 : i32
    %c0_i32_0 = arith.constant 0 : i32
    %c0_i32_1 = arith.constant 0 : i32
    return %c0_i32, %c0_i32_0 : i32, i32
  }
  func.func @transform_3(%arg0: i32) -> (i32, i32) {
    %c0_i32 = arith.constant 0 : i32
    %c0_i32_0 = arith.constant 0 : i32
    %c0_i32_1 = arith.constant 0 : i32
    return %c0_i32, %c0_i32_0 : i32, i32
  }
  func.func @transform_4(%arg0: i32) -> (i32, i32) {
    %c0_i32 = arith.constant 0 : i32
    %c0_i32_0 = arith.constant 0 : i32
    %c0_i32_1 = arith.constant 0 : i32
    return %c0_i32, %c0_i32_0 : i32, i32
  }
  func.func @transform_5(%arg0: i32) -> (i32, i32) {
    %c0_i32 = arith.constant 0 : i32
    %c0_i32_0 = arith.constant 0 : i32
    return %arg0, %c0_i32 : i32, i32
  }
}

</mosaic_0001>

<bundles_post_ra>
// kernel: mlp_forward.1
= control target key start
LH: loop header
LB: loop body
LE: loop exit
PB: predicated region body
PF: predicated region fallthrough
CT: control target
= control target key end

     0   :  { %v381_v1 = vmov 0.0   ;;  %vm382_vm0 = vmmov 0   ;;  %s483_s0 = inlined_call_operand.vmem [shape: bf16[8,128], index: 0, kind: input, shape index: {}]   ;;  %s484_s1 = inlined_call_operand.vmem [shape: bf16[128,128], index: 1, kind: input, shape index: {}]   ;;  %s485_s2 = inlined_call_operand.vmem [shape: f32[1,128], index: 2, kind: input, shape index: {}]   ;;  %s486_s3 = inlined_call_operand.vmem [shape: bf16[128,128], index: 3, kind: input, shape index: {}]   ;;  %s487_s4 = inlined_call_operand.vmem [shape: f32[1,128], index: 4, kind: input, shape index: {}]   ;;  %s488_s5 = inlined_call_operand.hbm [shape: f32[8,128], index: 5, kind: output, shape index: {}]  }
   0x1   :  { %v341_v0 = vld [vmem:[%s484_s1] sm:$0xff]   ;;  %298 = vmatprep.subr.bf16.mxu0 %v381_v1  ;;  %318 = vmatprep.subr.bf16.mxu1 %v381_v1  ;;  %v342_v2 = vld [vmem:[%s484_s1 + $0x8] sm:$0xff]   ;;  %v343_v3 = vld [vmem:[%s484_s1 + $0x10] sm:$0xff]  }
   0x2   :  { %299 = vmatpush3.bf16.msra.mxu0 %v341_v0  ;;  %314 = vmatprep.mubr.msk.bf16.mxu0 %vm382_vm0, %v381_v1  ;;  %v349_v4 = vld [vmem:[%s486_s3] sm:$0xff]   ;;  %v344_v5 = vld [vmem:[%s484_s1 + $0x18] sm:$0xff]   ;;  %v350_v6 = vld [vmem:[%s486_s3 + $0x8] sm:$0xff]  }
   0x3   :  { %300 = vmatprep.subr.bf16.mxu0 %v381_v1  ;;  %334 = vmatprep.mubr.msk.bf16.mxu1 %vm382_vm0, %v381_v1  ;;  %v345_v7 = vld [vmem:[%s484_s1 + $0x20] sm:$0xff]   ;;  %v351_v8 = vld [vmem:[%s486_s3 + $0x10] sm:$0xff]  }
   0x4   :  { %319 = vmatpush3.bf16.msra.mxu1 %v349_v4 }
   0x5   :  { %320 = vmatprep.subr.bf16.mxu1 %v381_v1 }
   0x6   :  { %301 = vmatpush3.bf16.msra.mxu0 %v342_v2 }
   0x7   :  { %302 = vmatprep.subr.bf16.mxu0 %v381_v1 }
   0x8   :  { %321 = vmatpush3.bf16.msra.mxu1 %v350_v6 }
   0x9   :  { %322 = vmatprep.subr.bf16.mxu1 %v381_v1 }
   0xa   :  { %303 = vmatpush3.bf16.msra.mxu0 %v343_v3 }
   0xb   :  { %304 = vmatprep.subr.bf16.mxu0 %v381_v1 }
   0xe   :  { %305 = vmatpush3.bf16.msra.mxu0 %v344_v5 }
   0xf   :  { %306 = vmatprep.subr.bf16.mxu0 %v381_v1 }
  0x10   :  { %10 = vsyncpa [#allocation3], 0  ;;  %v346_v9 = vld [vmem:[%s484_s1 + $0x28] sm:$0xff]   ;;  %323 = vmatpush3.bf16.msra.mxu1 %v351_v8  ;;  %v352_v10 = vld [vmem:[%s486_s3 + $0x18] sm:$0xff]   ;;  %s383_s29 = smov [#allocation2]  }
  0x11   :  { %324 = vmatprep.subr.bf16.mxu1 %v381_v1  ;;  %v347_v11 = vld [vmem:[%s484_s1 + $0x30] sm:$0xff]   ;;  %v353_v12 = vld [vmem:[%s486_s3 + $0x20] sm:$0xff]   ;;  %v348_v13 = vld [vmem:[%s484_s1 + $0x38] sm:$0xff]   ;;  %s254_s30 = sshll.u32 %s383_s29, 4  ;;  %s255_s30 = int_to_ptr.vmem [resolvable:$true] %s254_s30 }
  0x12   :  { %307 = vmatpush3.bf16.msra.mxu0 %v345_v7  ;;  %v354_v14 = vld [vmem:[%s486_s3 + $0x28] sm:$0xff]   ;;  %v22_v15 = vld [vmem:[%s483_s0] sm:$0xf]  ;;  %v355_v16 = vld [vmem:[%s486_s3 + $0x30] sm:$0xff]   ;;  %p362_p1 = scmp.lt.s32.totalorder %s255_s30, %s255_s30 }
  0x13   :  { %308 = vmatprep.subr.bf16.mxu0 %v381_v1  ;;  %v356_v17 = vld [vmem:[%s486_s3 + $0x38] sm:$0xff]   ;;  %v262_v18 = vld [vmem:[%s485_s2] ss:$0 sm:$0xff]  ;;  %s357_s2 = scalar_lea.vmem %s255_s30, 128 }
  0x14   :  { %325 = vmatpush3.bf16.msra.mxu1 %v352_v10  ;;  %v271_v26 = vld [vmem:[%s487_s4] ss:$0 sm:$0xff]  ;;  %p358_p0 = scmp.ne.s32.totalorder %s255_s30, %s357_s2  ;;  %p363_p2 = scmp.lt.s32.totalorder %s357_s2, %s357_s2 }
  0x15   :  { %326 = vmatprep.subr.bf16.mxu1 %v381_v1 }
  0x16   :  { %309 = vmatpush3.bf16.msra.mxu0 %v346_v9  ;;  %p364_p3 = por %p363_p2, %p362_p1 }
  0x17   :  { %310 = vmatprep.subr.bf16.mxu0 %v381_v1 }
  0x18   :  { %327 = vmatpush3.bf16.msra.mxu1 %v353_v12  ;;  %p365_p4 = pnand %p364_p3, %p358_p0 }
  0x19   :  { %328 = vmatprep.subr.bf16.mxu1 %v381_v1 }
  0x1a   :  { %311 = vmatpush3.bf16.msra.mxu0 %v347_v11 }
  0x1b   :  { %312 = vmatprep.subr.bf16.mxu0 %v381_v1 }
  0x1c   :  { %329 = vmatpush3.bf16.msra.mxu1 %v354_v14 }
  0x1d   :  { %330 = vmatprep.subr.bf16.mxu1 %v381_v1 }
  0x1e   :  { %313 = vmatpush3.bf16.msra.mxu0 %v348_v13 }
  0x20   :  { %331 = vmatpush3.bf16.msra.mxu1 %v355_v16 }
  0x21   :  { %315 = vmatmul.mubr.bf16.vlgmr.msra.gmra.mrb[0].mxu0 %v22_v15  ;;  %332 = vmatprep.subr.bf16.mxu1 %v381_v1 }
  0x24   :  { %333 = vmatpush3.bf16.msra.mxu1 %v356_v17 }
  0xf4   :  { %v128_v19 = vpop.f32.mrb[0].mxu0 }
  0xf5   :  { %v129_v20 = vadd.f32 %v262_v18, %v128_v19  ;;  %v316_v21 = vpop.f32.mrb[1].mxu0 }
  0xf6   :  { %v131_v22 = vpop.f32.mrb[2].mxu0 }
  0xf7   :  { %v134_v23 = vmax.f32 %v129_v20, 0.0  ;;  %v317_v24 = vpop.f32.mrb[3].mxu0 }
  0xf9   :  { %v135_v25 = vpack.c.bf16 %v134_v23, %v134_v23 }
  0xfb   :  { %335 = vmatmul.mubr.bf16.vlgmr.msra.gmra.mrb[0].mxu1 %v135_v25 }
 0x1ce   :  { %v241_v27 = vpop.f32.mrb[0].mxu1 }
 0x1cf   :  { %v242_v28 = vadd.f32 %v271_v26, %v241_v27  ;;  %v336_v29 = vpop.f32.mrb[1].mxu1 }
 0x1d0   :  { %v244_v30 = vpop.f32.mrb[2].mxu1 }
 0x1d1   :  { %247 = vst [vmem:[#allocation2] sm:$0xff] %v242_v28  ;;  %v337_v31 = vpop.f32.mrb[3].mxu1 }
 0x1d2   :  { %368 = shalt.err (!%p365_p4)
}
 0x1d3   :  { %s369_s4 = scalar_lea.hbm %s488_s5, 128 }
 0x1d4   :  { %p370_p5 = scmp.ne.s32.totalorder %s488_s5, %s369_s4  ;;  %p373_p6 = scmp.lt.u32.totalorder %s369_s4, %s488_s5 }
 0x1d6   :  { %p375_p7 = pnand %p373_p6, %p370_p5 }
 0x1d8   :  { %378 = shalt.err (!%p375_p7)
}
 0x1d9   :  { %257 = dma.vmem_to_hbm [thread:$0]  %s255_s30, 128, %s488_s5, [#allocation3]  }
 0x1da   :  { %379 = dma.done.wait [#allocation3], 128  }
 0x1db   :  { %380 = vsyncadd [#allocation3], 4294967168 }
 0x1dc   :  { %261 = vsyncpa [#allocation3], 1 }

</bundles_post_ra>
